<compile_context>
chip_gen: v6e
topology: v6e:2x2x1
jax: 0.10.0
libtpu: 0.0.40
codegen_flags: <defaults>
</compile_context>

<pallas_src>
import functools

import jax
import jax.numpy as jnp
from jax.experimental import pallas as pl
from jax.experimental.pallas import tpu as pltpu


def _bce_duie_bi_kernel(x_ref, y_ref, m_ref, chw_ref, rt_ref,
                        out_ref, num_acc, den_acc, *, inv_c):
    """One (batch-tile, sequence-tile) grid step.

    x_ref, y_ref : (B_t, T)    lane-dense flattened (seq*class) logits / labels
    m_ref        : (B_t, S_t)  token mask for this sequence tile
    chw_ref      : (1, T)      class-weight coefficient per flat position
                               (0 for class 0, weight_coef-1 otherwise)
    rt_ref       : (S_t, T)    constant 0/1 token->flat expansion matrix
    out_ref      : (B_t, 1)    per-batch loss, written on the last sequence step
    num_acc/den_acc : (B_t, 1) f32 VMEM accumulators
    """
    ti = pl.program_id(1)

    @pl.when(ti == 0)
    def _init():
        num_acc[...] = jnp.zeros_like(num_acc)
        den_acc[...] = jnp.zeros_like(den_acc)

    x = x_ref[...].astype(jnp.float32)
    y = y_ref[...].astype(jnp.float32)

    # BCEWithLogitsLoss(reduction='none'), numerically stable form:
    #   max(x, 0) - x*y + log(1 + exp(-|x|))
    bce = jnp.maximum(x, 0.0) - x * y + jnp.log1p(jnp.exp(-jnp.abs(x)))

    # Class re-weighting: w = 1 + coef*y for classes >= 1, w = 1 for class 0.
    # `chw` already encodes the class pattern, so no iota/compare/select here.
    weighted = bce * (1.0 + y * chw_ref[...])

    # Expand the (B_t, S_t) token mask to flat (B_t, T) on the otherwise-idle
    # MXU.  For a 0/1 mask each output element selects exactly one 0/1 input,
    # so this matmul is exact in bf16 or f32 irrespective of MXU precision.
    m_exp = jnp.dot(m_ref[...], rt_ref[...],
                    preferred_element_type=jnp.float32)

    # Masked sum over this tile's (token, class) elements; class-mean (1/C) and
    # the per-batch division are applied once at finalize.
    num_acc[...] += jnp.sum(weighted * m_exp, axis=1, keepdims=True)
    den_acc[...] += jnp.sum(m_ref[...].astype(jnp.float32),
                            axis=1, keepdims=True)

    @pl.when(ti == pl.num_programs(1) - 1)
    def _finalize():
        # NOTE: a fully-masked row (sum(mask) == 0) divides by zero here, which
        # matches the PyTorch reference (Inf/NaN propagates into the mean).
        out_ref[...] = (num_acc[...] * inv_c) * pl.reciprocal(
            den_acc[...], approx=False)


_RT_BUDGET = 4 << 20          # single-buffer byte cap for the rt matrix
_VMEM_BUDGET = 40 << 20       # per-step VMEM budget (v7x: 64 MiB physical)


def _maybe_pad_seq(S, C, rt_elem_bytes):
    """Sequence length actually fed to the kernel (padded with mask=0)."""
    if S % 128 == 0:
        return S
    if S * S * C * rt_elem_bytes <= _RT_BUDGET:
        return S              # one full-sequence tile is cheap enough
    return ((S + 127) // 128) * 128


def _choose_tok_tile(S, C, rt_elem_bytes):
    if S % 128 != 0:
        return S              # single tile (full-dim blocks are always legal)
    tok = 128
    while (S % (tok * 2) == 0
           and (tok * 2) * (tok * 2) * C * rt_elem_bytes <= _RT_BUDGET):
        tok *= 2
    return tok


def _choose_b_tile(B, T, rt_bytes, label_bytes):
    cands = [c for c in (128, 64, 32, 16, 8) if B % c == 0]
    if not cands:
        return B              # small / odd batch: single (full-dim) batch block

    def vmem_ok(c):
        blk = c * T
        # double-buffered f32 logits + labels + rt, plus ~4 f32 temporaries
        need = 2 * blk * (4 + label_bytes) + 2 * rt_bytes + 4 * 4 * blk
        return need <= _VMEM_BUDGET

    # Prefer the largest tile that still leaves >= 2 batch blocks so v7x's
    # second TensorCore gets work on the "parallel" batch axis.
    for c in cands:
        if B // c >= 2 and vmem_ok(c):
            return c
    for c in cands:
        if vmem_ok(c):
            return c
    return cands[-1]


def bce_loss_duie_bi(logits, labels, mask, *, weight_coef,
                     binary_labels=True, binary_mask=True):
    """Pallas TPU version of BCELossForDuIE_BI.forward.

    Args:
      logits: (B, S, C) float
      labels: (B, S, C) float.  If `binary_labels`, they travel as bf16
              (lossless for 0/1 labels, cuts HBM bytes); set False for soft labels.
      mask:   (B, S) 0/1 float/int.  `binary_mask=False` keeps the mask and the
              expansion matrix in f32 for non-binary masks.
      weight_coef: args.weight_coef (the kernel uses weight_coef - 1, exactly
              like the PyTorch module's __init__).
    Returns: scalar float32 loss.
    """
    B, S, C = logits.shape
    coef = float(weight_coef) - 1.0

    label_dt = jnp.bfloat16 if binary_labels else jnp.float32
    mr_dt = jnp.bfloat16 if binary_mask else jnp.float32
    mr_bytes = jnp.dtype(mr_dt).itemsize
    label_bytes = jnp.dtype(label_dt).itemsize

    # Pad long ragged sequences up to a multiple of 128 with mask=0 (exact:
    # padded tokens contribute 0 to both numerator and denominator).
    S_pad = _maybe_pad_seq(S, C, mr_bytes)
    if S_pad != S:
        pad = S_pad - S
        logits = jnp.pad(logits, ((0, 0), (0, pad), (0, 0)))
        labels = jnp.pad(labels, ((0, 0), (0, pad), (0, 0)))
        mask = jnp.pad(mask, ((0, 0), (0, pad)))
        S = S_pad

    tok_tile = _choose_tok_tile(S, C, mr_bytes)
    T = tok_tile * C
    rt_bytes = tok_tile * T * mr_bytes
    b_tile = _choose_b_tile(B, T, rt_bytes, label_bytes)
    nb, nt = B // b_tile, S // tok_tile

    # Lane-dense layout: flatten (B, S, C) -> (B, S*C); free (no data movement).
    x2d = logits.reshape(B, S * C)
    y2d = labels.reshape(B, S * C).astype(label_dt)
    m2d = mask.astype(mr_dt)

    # (1, T) class-weight coefficient row: 0 at class-0 positions, coef else.
    ch = jnp.arange(T, dtype=jnp.int32) % C
    chw = jnp.where(ch == 0, 0.0, coef).astype(jnp.float32)[None, :]

    # (tok_tile, T) 0/1 token -> flat expansion matrix: rt[t, f] = (f // C == t).
    rt = (jnp.arange(T, dtype=jnp.int32)[None, :] // C
          == jnp.arange(tok_tile, dtype=jnp.int32)[:, None]).astype(mr_dt)

    kernel = functools.partial(_bce_duie_bi_kernel, inv_c=1.0 / C)

    # TODO(synk): the constant-index chw/rt blocks could be single-buffered via
    # pipeline_mode=pl.Buffered(1); left at the default double buffer (already
    # accounted for in the VMEM budget) to keep the lowering path conservative.
    per_batch = pl.pallas_call(
        kernel,
        out_shape=jax.ShapeDtypeStruct((B, 1), jnp.float32),
        grid_spec=pltpu.PrefetchScalarGridSpec(
            num_scalar_prefetch=0,
            grid=(nb, nt),
            in_specs=[
                pl.BlockSpec((b_tile, T), lambda bi, ti: (bi, ti)),        # logits
                pl.BlockSpec((b_tile, T), lambda bi, ti: (bi, ti)),        # labels
                pl.BlockSpec((b_tile, tok_tile), lambda bi, ti: (bi, ti)), # mask
                pl.BlockSpec((1, T), lambda bi, ti: (0, 0)),               # chw
                pl.BlockSpec((tok_tile, T), lambda bi, ti: (0, 0)),        # rt
            ],
            out_specs=pl.BlockSpec((b_tile, 1), lambda bi, ti: (bi, 0)),
            scratch_shapes=[
                pltpu.VMEM((b_tile, 1), jnp.float32),   # num accumulator
                pltpu.VMEM((b_tile, 1), jnp.float32),   # den accumulator
            ],
        ),
        compiler_params=pltpu.CompilerParams(
            dimension_semantics=("parallel", "arbitrary"),
            vmem_limit_bytes=48 * 1024 * 1024),
    )(x2d, y2d, m2d, chw, rt)

    # Tiny (B,) -> scalar mean kept outside the kernel so the batch grid axis
    # can stay "parallel" (v7x megacore) instead of forcing a cross-core scalar.
    return jnp.mean(per_batch[:, 0])


def _reference(logits, labels, mask, *, weight_coef):
    # Pure-JAX mirror of the PyTorch module, for correctness checking.
    x = logits.astype(jnp.float32)
    y = labels.astype(jnp.float32)
    m = mask.astype(jnp.float32)
    coef = float(weight_coef) - 1.0
    bce = jnp.maximum(x, 0.0) - x * y + jnp.log1p(jnp.exp(-jnp.abs(x)))
    w = jnp.ones_like(y).at[:, :, 1:].add(y[:, :, 1:] * coef)
    loss = bce * w * m[:, :, None]
    loss = jnp.sum(jnp.mean(loss, axis=2), axis=1) / jnp.sum(m, axis=1)
    return jnp.mean(loss)


def _run_case(key, B, S, C, valid_len, weight_coef):
    k1, k2 = jax.random.split(key)
    logits = jax.random.normal(k1, (B, S, C), dtype=jnp.float32)
    labels = jax.random.bernoulli(k2, p=0.3, shape=(B, S, C)).astype(jnp.float32)
    mask = (jnp.arange(S)[None, :] < jnp.asarray(valid_len)[:, None]).astype(
        jnp.float32)

    out = bce_loss_duie_bi(logits, labels, mask, weight_coef=weight_coef)
    out = jax.block_until_ready(out)
    ref = _reference(logits, labels, mask, weight_coef=weight_coef)
    assert jnp.allclose(out, ref, rtol=1e-5, atol=1e-6), (B, S, C, out, ref)


if __name__ == "__main__":
    key = jax.random.PRNGKey(0)
    k1, k2, k3 = jax.random.split(key, 3)

    weight_coef = 3.0  # deterministic synthetic args.weight_coef

    # Small shape from the module spec (single grid step, full-dim blocks).
    _run_case(k1, B=2, S=8, C=32, valid_len=[6, 4], weight_coef=weight_coef)

    # Shape exercising the 256-token tile path (single grid step).
    _run_case(k2, B=4, S=256, C=32, valid_len=[256, 192, 128, 64],
              weight_coef=weight_coef)

    # Shape exercising the full pipelined path: 2 batch blocks ("parallel")
    # x 2 sequence tiles ("arbitrary" accumulation with init/finalize).
    _run_case(k3, B=16, S=512, C=32,
              valid_len=[512 - 17 * i for i in range(16)],
              weight_coef=weight_coef)

    print("KERNEL_OK")
</pallas_src>

<mosaic_0001>
module attributes {stable_mosaic.version = 11 : i64} {
  func.func @_bce_duie_bi_kernel(%arg0: i32, %arg1: i32, %arg2: memref<2x256xf32, #tpu.memory_space<vmem>>, %arg3: memref<2x256xbf16, #tpu.memory_space<vmem>>, %arg4: memref<2x8xbf16, #tpu.memory_space<vmem>>, %arg5: memref<1x256xf32, #tpu.memory_space<vmem>>, %arg6: memref<8x256xbf16, #tpu.memory_space<vmem>>, %arg7: memref<2x1xf32, #tpu.memory_space<vmem>>, %arg8: memref<2x1xf32, #tpu.memory_space<vmem>>, %arg9: memref<2x1xf32, #tpu.memory_space<vmem>>) attributes {dimension_semantics = [#tpu.dimension_semantics<parallel>, #tpu.dimension_semantics<arbitrary>], iteration_bounds = array<i64: 1, 1>, scalar_prefetch = 0 : i64, scratch_operands = 2 : i64, tpu.core_type = #tpu.core_type<tc>, window_params = [{transform_indices = @transform_0, window_bounds = array<i64: 2, 256>}, {transform_indices = @transform_1, window_bounds = array<i64: 2, 256>}, {transform_indices = @transform_2, window_bounds = array<i64: 2, 8>}, {pipeline_mode = #tpu.pipeline_mode<synchronous>, transform_indices = @transform_3, window_bounds = array<i64: 1, 256>}, {pipeline_mode = #tpu.pipeline_mode<synchronous>, transform_indices = @transform_4, window_bounds = array<i64: 8, 256>}, {transform_indices = @transform_5, window_bounds = array<i64: 2, 1>}]} {
    %c0_i32 = arith.constant 0 : i32
    %0 = arith.cmpi eq, %arg1, %c0_i32 : i32
    %1 = arith.extui %0 : i1 to i32
    %c0_i32_0 = arith.constant 0 : i32
    %2 = arith.cmpi ne, %1, %c0_i32_0 : i32
    scf.if %2 {
      %cst_27 = arith.constant 0.000000e+00 : f32
      %41 = vector.broadcast %cst_27 : f32 to vector<2x1xf32>
      %c0_28 = arith.constant 0 : index
      %c0_29 = arith.constant 0 : index
      %42 = vector.load %arg8[%c0_28, %c0_29] : memref<2x1xf32, #tpu.memory_space<vmem>>, vector<2x1xf32>
      tpu.vector_store %arg8[%c0_28, %c0_29], %41 {strides = array<i32>} : memref<2x1xf32, #tpu.memory_space<vmem>>, vector<2x1xf32>,
      %cst_30 = arith.constant 0.000000e+00 : f32
      %43 = vector.broadcast %cst_30 : f32 to vector<2x1xf32>
      %c0_31 = arith.constant 0 : index
      %c0_32 = arith.constant 0 : index
      %44 = vector.load %arg9[%c0_31, %c0_32] : memref<2x1xf32, #tpu.memory_space<vmem>>, vector<2x1xf32>
      tpu.vector_store %arg9[%c0_31, %c0_32], %43 {strides = array<i32>} : memref<2x1xf32, #tpu.memory_space<vmem>>, vector<2x1xf32>,
    } else {
    }
    %c0 = arith.constant 0 : index
    %c0_1 = arith.constant 0 : index
    %3 = vector.load %arg2[%c0, %c0_1] : memref<2x256xf32, #tpu.memory_space<vmem>>, vector<2x256xf32>
    %c0_2 = arith.constant 0 : index
    %c0_3 = arith.constant 0 : index
    %4 = vector.load %arg3[%c0_2, %c0_3] : memref<2x256xbf16, #tpu.memory_space<vmem>>, vector<2x256xbf16>
    %5 = arith.extf %4 : vector<2x256xbf16> to vector<2x256xf32>
    %cst = arith.constant 0.000000e+00 : f32
    %6 = vector.broadcast %cst : f32 to vector<2x256xf32>
    %7 = arith.maximumf %3, %6 : vector<2x256xf32>
    %8 = arith.mulf %3, %5 : vector<2x256xf32>
    %9 = arith.subf %7, %8 : vector<2x256xf32>
    %10 = math.absf %3 : vector<2x256xf32>
    %cst_4 = arith.constant 0.000000e+00 : f32
    %11 = vector.broadcast %cst_4 : f32 to vector<2x256xf32>
    %12 = arith.subf %11, %10 : vector<2x256xf32>
    %13 = math.exp %12 : vector<2x256xf32>
    %14 = math.log1p %13 : vector<2x256xf32>
    %15 = arith.addf %9, %14 : vector<2x256xf32>
    %c0_5 = arith.constant 0 : index
    %c0_6 = arith.constant 0 : index
    %16 = vector.load %arg5[%c0_5, %c0_6] : memref<1x256xf32, #tpu.memory_space<vmem>>, vector<1x256xf32>
    %17 = vector.broadcast %16 : vector<1x256xf32> to vector<2x256xf32>
    %18 = arith.mulf %5, %17 : vector<2x256xf32>
    %cst_7 = arith.constant 1.000000e+00 : f32
    %19 = vector.broadcast %cst_7 : f32 to vector<2x256xf32>
    %20 = arith.addf %19, %18 : vector<2x256xf32>
    %21 = arith.mulf %15, %20 : vector<2x256xf32>
    %c0_8 = arith.constant 0 : index
    %c0_9 = arith.constant 0 : index
    %22 = vector.load %arg4[%c0_8, %c0_9] : memref<2x8xbf16, #tpu.memory_space<vmem>>, vector<2x8xbf16>
    %c0_10 = arith.constant 0 : index
    %c0_11 = arith.constant 0 : index
    %23 = vector.load %arg6[%c0_10, %c0_11] : memref<8x256xbf16, #tpu.memory_space<vmem>>, vector<8x256xbf16>
    %cst_12 = arith.constant dense<0.000000e+00> : vector<2x256xf32>
    %24 = tpu.matmul %22, %23, %cst_12 {dimension_numbers = #tpu.dot_dimension_numbers<[1], [0], [0], [1], [0, 0, 1, 1], [], []>} : vector<2x8xbf16>, vector<8x256xbf16>, vector<2x256xf32> -> vector<2x256xf32>
    %c0_13 = arith.constant 0 : index
    %c0_14 = arith.constant 0 : index
    %25 = vector.load %arg8[%c0_13, %c0_14] : memref<2x1xf32, #tpu.memory_space<vmem>>, vector<2x1xf32>
    %26 = arith.mulf %21, %24 : vector<2x256xf32>
    %cst_15 = arith.constant dense<0.000000e+00> : vector<2xf32>
    %27 = vector.multi_reduction <add>, %26, %cst_15 [1] : vector<2x256xf32> to vector<2xf32>
    %28 = vector.shape_cast %27 : vector<2xf32> to vector<2x1xf32>
    %29 = arith.addf %25, %28 : vector<2x1xf32>
    %c0_16 = arith.constant 0 : index
    %c0_17 = arith.constant 0 : index
    %30 = vector.load %arg8[%c0_16, %c0_17] : memref<2x1xf32, #tpu.memory_space<vmem>>, vector<2x1xf32>
    tpu.vector_store %arg8[%c0_16, %c0_17], %29 {strides = array<i32>} : memref<2x1xf32, #tpu.memory_space<vmem>>, vector<2x1xf32>,
    %c0_18 = arith.constant 0 : index
    %c0_19 = arith.constant 0 : index
    %31 = vector.load %arg9[%c0_18, %c0_19] : memref<2x1xf32, #tpu.memory_space<vmem>>, vector<2x1xf32>
    %c0_20 = arith.constant 0 : index
    %c0_21 = arith.constant 0 : index
    %32 = vector.load %arg4[%c0_20, %c0_21] : memref<2x8xbf16, #tpu.memory_space<vmem>>, vector<2x8xbf16>
    %33 = arith.extf %32 : vector<2x8xbf16> to vector<2x8xf32>
    %cst_22 = arith.constant dense<0.000000e+00> : vector<2xf32>
    %34 = vector.multi_reduction <add>, %33, %cst_22 [1] : vector<2x8xf32> to vector<2xf32>
    %35 = vector.shape_cast %34 : vector<2xf32> to vector<2x1xf32>
    %36 = arith.addf %31, %35 : vector<2x1xf32>
    %c0_23 = arith.constant 0 : index
    %c0_24 = arith.constant 0 : index
    %37 = vector.load %arg9[%c0_23, %c0_24] : memref<2x1xf32, #tpu.memory_space<vmem>>, vector<2x1xf32>
    tpu.vector_store %arg9[%c0_23, %c0_24], %36 {strides = array<i32>} : memref<2x1xf32, #tpu.memory_space<vmem>>, vector<2x1xf32>,
    %c0_i32_25 = arith.constant 0 : i32
    %38 = arith.cmpi eq, %arg1, %c0_i32_25 : i32
    %39 = arith.extui %38 : i1 to i32
    %c0_i32_26 = arith.constant 0 : i32
    %40 = arith.cmpi ne, %39, %c0_i32_26 : i32
    scf.if %40 {
      %c0_27 = arith.constant 0 : index
      %c0_28 = arith.constant 0 : index
      %41 = vector.load %arg8[%c0_27, %c0_28] : memref<2x1xf32, #tpu.memory_space<vmem>>, vector<2x1xf32>
      %cst_29 = arith.constant 3.125000e-02 : f32
      %42 = vector.broadcast %cst_29 : f32 to vector<2x1xf32>
      %43 = arith.mulf %41, %42 : vector<2x1xf32>
      %c0_30 = arith.constant 0 : index
      %c0_31 = arith.constant 0 : index
      %44 = vector.load %arg9[%c0_30, %c0_31] : memref<2x1xf32, #tpu.memory_space<vmem>>, vector<2x1xf32>
      %45 = tpu.reciprocal %44 : vector<2x1xf32> -> vector<2x1xf32>
      %46 = arith.mulf %43, %45 : vector<2x1xf32>
      %c0_32 = arith.constant 0 : index
      %c0_33 = arith.constant 0 : index
      %47 = vector.load %arg7[%c0_32, %c0_33] : memref<2x1xf32, #tpu.memory_space<vmem>>, vector<2x1xf32>
      tpu.vector_store %arg7[%c0_32, %c0_33], %46 {strides = array<i32>} : memref<2x1xf32, #tpu.memory_space<vmem>>, vector<2x1xf32>,
    } else {
    }
    return
  }
  func.func @transform_0(%arg0: i32, %arg1: i32) -> (i32, i32) {
    %c0_i32 = arith.constant 0 : i32
    return %arg0, %arg1 : i32, i32
  }
  func.func @transform_1(%arg0: i32, %arg1: i32) -> (i32, i32) {
    %c0_i32 = arith.constant 0 : i32
    return %arg0, %arg1 : i32, i32
  }
  func.func @transform_2(%arg0: i32, %arg1: i32) -> (i32, i32) {
    %c0_i32 = arith.constant 0 : i32
    return %arg0, %arg1 : i32, i32
  }
  func.func @transform_3(%arg0: i32, %arg1: i32) -> (i32, i32) {
    %c0_i32 = arith.constant 0 : i32
    %c0_i32_0 = arith.constant 0 : i32
    %c0_i32_1 = arith.constant 0 : i32
    return %c0_i32, %c0_i32_0 : i32, i32
  }
  func.func @transform_4(%arg0: i32, %arg1: i32) -> (i32, i32) {
    %c0_i32 = arith.constant 0 : i32
    %c0_i32_0 = arith.constant 0 : i32
    %c0_i32_1 = arith.constant 0 : i32
    return %c0_i32, %c0_i32_0 : i32, i32
  }
  func.func @transform_5(%arg0: i32, %arg1: i32) -> (i32, i32) {
    %c0_i32 = arith.constant 0 : i32
    %c0_i32_0 = arith.constant 0 : i32
    return %arg0, %c0_i32 : i32, i32
  }
}

</mosaic_0001>

<bundles_post_ra>
// kernel: tpu_custom_call.1
= control target key start
LH: loop header
LB: loop body
LE: loop exit
PB: predicated region body
PF: predicated region fallthrough
CT: control target
= control target key end

     0   :  { %10 = vsyncpa [#allocation5], 0  ;;  %s365_s0 = inlined_call_operand.hbm [shape: f32[2,256], index: 0, kind: input, shape index: {}]   ;;  %s366_s1 = inlined_call_operand.hbm [shape: bf16[2,256], index: 1, kind: input, shape index: {}]   ;;  %s367_s2 = inlined_call_operand.vmem [shape: bf16[2,8], index: 2, kind: input, shape index: {}]   ;;  %s368_s3 = inlined_call_operand.vmem [shape: f32[1,256], index: 3, kind: input, shape index: {}]   ;;  %s369_s4 = inlined_call_operand.hbm [shape: bf16[8,256], index: 4, kind: input, shape index: {}]   ;;  %s370_s5 = inlined_call_operand.vmem [shape: f32[2,1], index: 5, kind: output, shape index: {}]  }
   0x1   :  { %11 = vsyncpa [#allocation7], 0  ;;  %s303_s18 = smov [#allocation6]   ;;  %s304_s20 = smov [#allocation4]  }
   0x2   :  { %s28_s19 = sshll.u32 %s303_s18, 4  ;;  %s18_s21 = sshll.u32 %s304_s20, 4  ;;  %s29_s19 = int_to_ptr.vmem [resolvable:$true] %s28_s19  ;;  %s19_s21 = int_to_ptr.vmem [resolvable:$true] %s18_s21 }
   0x3   :  { %s247_s22 = scalar_lea.vmem %s29_s19, 32  ;;  %p252_p1 = scmp.lt.s32.totalorder %s29_s19, %s29_s19 }
   0x4   :  { %p248_p0 = scmp.ne.s32.totalorder %s29_s19, %s247_s22  ;;  %p253_p2 = scmp.lt.s32.totalorder %s247_s22, %s247_s22 }
   0x6   :  { %p254_p3 = por %p253_p2, %p252_p1 }
   0x8   :  { %p255_p4 = pnand %p254_p3, %p248_p0 }
   0xa   :  { %258 = shalt.err (!%p255_p4)
}
   0xb   :  { %31 = dma.hbm_to_vmem [thread:$0]  %s366_s1, 32, %s29_s19, [#allocation7]  }
   0xc   :  { %s267_s25 = scalar_lea.vmem %s19_s21, 64  ;;  %p272_p6 = scmp.lt.s32.totalorder %s19_s21, %s19_s21 }
   0xd   :  { %p268_p5 = scmp.ne.s32.totalorder %s19_s21, %s267_s25  ;;  %p273_p7 = scmp.lt.s32.totalorder %s267_s25, %s267_s25 }
   0xf   :  { %p274_p8 = por %p273_p7, %p272_p6 }
  0x11   :  { %p275_p9 = pnand %p274_p8, %p268_p5 }
  0x13   :  { %278 = shalt.err (!%p275_p9)
}
  0x14   :  { %21 = dma.hbm_to_vmem [thread:$0]  %s365_s0, 64, %s19_s21, [#allocation5]  }
  0x15   :  { %s305_s28 = smov [#allocation8]  }
  0x16   :  { %s42_s29 = sshll.u32 %s305_s28, 4  ;;  %s43_s29 = int_to_ptr.vmem [resolvable:$true] %s42_s29 }
  0x17   :  { %s287_s30 = scalar_lea.vmem %s43_s29, 128  ;;  %p292_p11 = scmp.lt.s32.totalorder %s43_s29, %s43_s29 }
  0x18   :  { %p288_p10 = scmp.ne.s32.totalorder %s43_s29, %s287_s30  ;;  %p293_p12 = scmp.lt.s32.totalorder %s287_s30, %s287_s30 }
  0x1a   :  { %p294_p13 = por %p293_p12, %p292_p11 }
  0x1c   :  { %p295_p0 = pnand %p294_p13, %p288_p10 }
  0x1e   :  { %298 = shalt.err (!%p295_p0)
}
  0x1f   :  { %45 = dma.hbm_to_vmem [thread:$0]  %s369_s4, 128, %s43_s29, [#allocation7]  }
  0x20   :  { %299 = dma.done.wait [#allocation5], 64  }
  0x21   :  { %300 = vsyncadd [#allocation5], 4294967232 }
  0x22   :  { %301 = dma.done.wait [#allocation7], 160  }
  0x23   :  { %302 = vsyncadd [#allocation7], 4294967136  ;;  %v306_v0 = vmov 0   ;;  %v106_v1 = vld [vmem:[#allocation8] sm:$0xff]  ;;  %vm116_vm0 = vcmask 1043456   ;;  %vm112_vm1 = vcmask 64512   ;;  %v85_v15 = vlaneseq }
  0x24   :  { %155 = vmatprep.mubr.bf16.mxu0 %v306_v0  ;;  %v222_v2 = vcombine.high %v106_v1, %v106_v1  ;;  %v221_v3 = vcombine.low %v106_v1, %v106_v1  ;;  %v105_v5 = vld [vmem:[%s367_s2] sm:$0x1]  ;;  %vm200_vm2 = vcmask 58368   ;;  %vm60_vm3 = vcmask 1024   ;;  %v63_v10 = vld [vmem:[#allocation4] sm:$0xf] }
  0x25   :  { %v198_v6 = vld [vmem:[%s367_s2] sm:$0x1]  ;;  %v307_v9 = vmov 0.0   ;;  %v69_v11 = vand.u32 2147483647, %v63_v10  ;;  %v86_v17 = vshrl.u32 %v85_v15, 7 }
  0x26   :  { %223 = vmatprep.subr.msk.bf16.mxu0 %vm116_vm0, %v222_v2  ;;  %v118_v4 = vsel %vm116_vm0, %v221_v3, 0  ;;  %v199_v7 = vunpack.c.l.bf16 %v198_v6  ;;  %62 = vst.msk [vmem:[#allocation3] sm:$0x3] %vm60_vm3, %v307_v9  ;;  %61 = vst.msk [vmem:[#allocation2] sm:$0x3] %vm60_vm3, %v307_v9  ;;  %v66_v34 = vmax.f32 %v63_v10, 0.0 }
  0x27   :  { %138 = vmatpush1.bf16.msra.mxu0 %v118_v4  ;;  %v70_v12 = vsub.f32 0.0, %v69_v11  ;;  %v87_v18 = vsub.s32 0, %v86_v17  ;;  %v91_v19 = vsub.s32 1, %v86_v17  ;;  %v308_v20 = vmov 1983009808  }
  0x28   :  { %v201_v8 = vsel %vm200_vm2, %v199_v7, 0.0  ;;  %v95_v21 = vunpack.c.l.s4 %v308_v20  ;;  %v83_v22 = vld [vmem:[%s368_s3] sm:$0x3]  ;;  %v64_v26 = vld [vmem:[#allocation6] sm:$0x3]  ;;  %vm188_vm5 = vcmask 1041408  }
  0x29   :  { %202 = vadd.xlane.f32.xlu0 %v201_v8  ;;  %v71_v13 = vmul.f32 1.442695, %v70_v12  ;;  %v88_v23 = vrot.slane %v83_v22, %v87_v18  ;;  %v92_v24 = vrot.slane %v83_v22, %v91_v19  ;;  %v65_v28 = vunpack.c.l.bf16 %v64_v26 }
  0x2a   :  { %224 = vmatmul.mubr.msk.bf16.vlgmr.msra.gmra.mxu0 %vm112_vm1, %v105_v5  ;;  %v96_v25 = vunpack.c.0.s8 %v95_v21 }
  0x2b   :  { %233 = vpow2.f32 %v71_v13  ;;  %v93_v29 = vcombine.low %v88_v23, %v92_v24  ;;  %v67_v35 = vmul.f32 %v65_v28, %v63_v10 }
  0x2c   :  { %v99_v30 = vsub.s32 %v96_v25, %v86_v17 }
  0x2d   :  { %v68_v39 = vsub.f32 %v66_v34, %v67_v35  ;;  %v197_v54 = vld [vmem:[#allocation3] sm:$0x3]  ;;  %v164_v61 = vld [vmem:[#allocation2] sm:$0x3] }
  0x2e   :  { %v100_v36 = vrot.slane %v93_v29, %v99_v30 }
  0x30   :  { %v102_v40 = vmul.f32 %v100_v36, %v65_v28 }
  0x32   :  { %v103_v43 = vadd.f32 1.0, %v102_v40 }
  0x38   :  { %v234_v14 = vpop.eup %233 }
  0x39   :  { %v73_v16 = vadd.f32 1.0, %v234_v14  ;;  %v76_v27 = vmul.f32 -0.5, %v234_v14  ;;  %v79_v33 = vand.u32 2147483647, %v234_v14 }
  0x3b   :  { %235 = vlog2.f32 %v73_v16  ;;  %v77_v31 = vadd.f32 1.0, %v76_v27  ;;  %vm80_vm4 = vcmp.lt.f32.partialorder %v79_v33, 0.0004427343 }
  0x3d   :  { %v78_v38 = vmul.f32 %v234_v14, %v77_v31 }
  0x48   :  { %v236_v32 = vpop.eup %235 }
  0x49   :  { %v75_v37 = vmul.f32 0.6931472, %v236_v32 }
  0x4b   :  { %v81_v41 = vsel %vm80_vm4, %v78_v38, %v75_v37 }
  0x4c   :  { %v82_v42 = vadd.f32 %v81_v41, %v68_v39 }
  0x4e   :  { %v104_v46 = vmul.f32 %v103_v43, %v82_v42 }
  0xb2   :  { %v203_v57 = vpop.xlane.xlu0 %202 }
  0xb3   :  { %v204_v59 = vadd.f32 %v203_v57, %v197_v54 }
  0xb5   :  { %205 = vst.msk [vmem:[#allocation3] sm:$0x3] %vm60_vm3, %v204_v59 }
  0xbc   :  { %v211_v60 = vld [vmem:[#allocation3] sm:$0x3] }
  0xbd   :  { %237 = vrcp.f32 %v211_v60 }
  0xca   :  { %v238_v0 = vpop.eup %237 }
  0xea   :  { %v157_v44 = vpop.f32.mrf.mxu0 }
  0xec   :  { %v159_v45 = vpop.f32.mrf.mxu0 }
  0xed   :  { %v167_v47 = vcombine.low %v157_v44, %v159_v45 }
  0xee   :  { %v161_v48 = vpop.f32.mrf.mxu0 }
  0xef   :  { %v174_v49 = vrot.slane %v167_v47, %v99_v30 }
  0xf0   :  { %v162_v50 = vpop.f32.mrf.mxu0 }
  0xf1   :  { %v176_v51 = vmul.f32 %v174_v49, %v104_v46 }
  0xf3   :  { %v184_v52 = vrot.slane %v176_v51, %v99_v30 }
  0xf5   :  { %v185_v53 = vcombine.high %v184_v52, %v184_v52  ;;  %v189_v55 = vsel %vm188_vm5, %v184_v52, 0.0 }
  0xf7   :  { %v190_v56 = vsel %vm188_vm5, %v185_v53, 0.0 }
  0xf8   :  { %v191_v58 = vadd.f32 %v190_v56, %v189_v55 }
  0xfa   :  { %192 = vadd.xlane.f32.xlu0 %v191_v58 }
 0x183   :  { %v193_v62 = vpop.xlane.xlu0 %192 }
 0x184   :  { %v194_v63 = vadd.f32 %v193_v62, %v164_v61 }
 0x186   :  { %196 = vst.msk [vmem:[#allocation2] sm:$0x3] %vm60_vm3, %v194_v63 }
 0x18d   :  { %v209_v1 = vld [vmem:[#allocation2] sm:$0x3] }
 0x18e   :  { %v210_v2 = vmul.f32 0.03125, %v209_v1 }
 0x190   :  { %v213_v3 = vmul.f32 %v238_v0, %v210_v2 }
 0x192   :  { %214 = vst.msk [vmem:[%s370_s5] sm:$0x3] %vm60_vm3, %v213_v3 }
 0x193   :  { %219 = vsyncpa [#allocation5], 1 }
 0x194   :  { %220 = vsyncpa [#allocation7], 1 }

</bundles_post_ra>
